<compile_context>
chip_gen: v7x
topology: tpu7x:2x2x1
jax: 0.10.0
libtpu: 0.0.40
codegen_flags: <defaults>
</compile_context>

<pallas_src>
import functools
import math

import jax
import jax.numpy as jnp
from jax.experimental import pallas as pl
from jax.experimental.pallas import tpu as pltpu


_VMEM_LIMIT = 32 * 1024 * 1024  # safe scoped-VMEM ceiling on v5e/v6e/v7x


def _round_up(x, m):
    return (x + m - 1) // m * m


def _pick_tile(n, cap):
    """Largest divisor of n that is <= cap and a multiple of 8; falls back to n
    (full extent) if none exists, which is always legal for a BlockSpec."""
    if n <= cap:
        return n
    for t in range(min(cap, n), 7, -1):
        if n % t == 0 and t % 8 == 0:
            return t
    return n


def _supports_bf16_eup():
    """bf16 transcendentals (EUP) exist on v6e/v7x; keep f32 exp on v2-v5."""
    try:
        kind = jax.devices()[0].device_kind.lower()
    except Exception:
        return False
    return not any(v in kind for v in ("v2", "v3", "v4", "v5"))


# ---------------------------------------------------------------------------
# Kernels
# ---------------------------------------------------------------------------
def _matmul_kernel(x_ref, w_ref, o_ref):
    # One (tm, K) row-tile of x against the full resident (K, N) weight.
    # bf16 operands, f32 MXU accumulation, lane-dense (tm, N) output store.
    o_ref[...] = jnp.dot(
        x_ref[...], w_ref[...], preferred_element_type=jnp.float32
    ).astype(o_ref.dtype)


def _matmul_bias_kernel(x_ref, w_ref, b_ref, o_ref):
    acc = jnp.dot(x_ref[...], w_ref[...], preferred_element_type=jnp.float32)
    o_ref[...] = (acc + b_ref[...].astype(jnp.float32)).astype(o_ref.dtype)


def _flash_attention_kernel(scale, use_bf16_exp,
                            q_ref, k_ref, v_ref, o_ref,
                            m_sc, l_sc, acc_sc):
    """Online-softmax attention.

    Grid: (batch, query-tile, kv-tile) with the kv axis innermost ("arbitrary").
    Blocks: q/o (1, H, tq, dh), k/v (1, H, tk, dh), all bf16.
    Scratch (f32, persistent across kv steps): m (H,tq,1), l (H,tq,1),
    acc (H,tq,dh).
    """
    kv = pl.program_id(2)

    @pl.when(kv == 0)
    def _():
        m_sc[...] = jnp.full(m_sc.shape, -jnp.inf, dtype=jnp.float32)
        l_sc[...] = jnp.zeros(l_sc.shape, jnp.float32)
        acc_sc[...] = jnp.zeros(acc_sc.shape, jnp.float32)

    # Scale q (O(tq*dh)) instead of the scores (O(tq*tk)); f32 math then back
    # to bf16 for the MXU.
    q = (q_ref[0].astype(jnp.float32) * scale).astype(jnp.bfloat16)   # (H,tq,dh)
    k = k_ref[0]                                                      # (H,tk,dh)
    v = v_ref[0]                                                      # (H,tk,dh)

    # QK^T as a contraction (no k.T relayout), f32 MXU accumulation.
    s = jnp.einsum("hqd,hkd->hqk", q, k,
                   preferred_element_type=jnp.float32)                # (H,tq,tk)

    m_prev = m_sc[...]
    m_new = jnp.maximum(m_prev, jnp.max(s, axis=-1, keepdims=True))   # (H,tq,1)
    alpha = jnp.exp(m_prev - m_new)                                   # (H,tq,1)

    x = s - m_new
    if use_bf16_exp:
        # v6e/v7x: bf16 EUP exp (~2x throughput on the binding slot).
        p = jnp.exp(x.astype(jnp.bfloat16))                           # (H,tq,tk)
        p_sum = jnp.sum(p.astype(jnp.float32), axis=-1, keepdims=True)
    else:
        p_f32 = jnp.exp(x)                                            # f32 exp (v5e)
        p_sum = jnp.sum(p_f32, axis=-1, keepdims=True)
        p = p_f32.astype(jnp.bfloat16)

    # Deferred normalization: contract the UN-normalized probabilities with V.
    l_sc[...] = alpha * l_sc[...] + p_sum
    acc_sc[...] = alpha * acc_sc[...] + jnp.einsum(
        "hqk,hkd->hqd", p, v, preferred_element_type=jnp.float32)     # (H,tq,dh)
    m_sc[...] = m_new

    @pl.when(kv == pl.num_programs(2) - 1)
    def _():
        # Single O(tq*dh) f32 normalization of the accumulated context.
        inv = pl.reciprocal(l_sc[...], approx=True)                   # EUP slot
        o_ref[0] = (acc_sc[...] * inv).astype(o_ref.dtype)


# ---------------------------------------------------------------------------
# Pallas wrappers
# ---------------------------------------------------------------------------
def matmul_pallas(x, w, bias=None, *, out_dtype=None, tm_max=512):
    """(M, K) @ (K, N) [+ bias] with bf16 MXU inputs and f32 accumulation.

    Rows are tiled with tm = min(512, round_up(M, 16)); M is padded so any M
    works. K and N stay fully resident (weights fit VMEM at this module's
    dims: 768 x 2304 bf16 ~ 3.4 MiB).
    """
    M, K = x.shape
    K2, N = w.shape
    assert K == K2
    out_dtype = out_dtype or x.dtype

    tm = min(tm_max, _round_up(M, 16))
    Mp = _round_up(M, tm)

    xb = x.astype(jnp.bfloat16)
    if Mp != M:
        xb = jnp.pad(xb, ((0, Mp - M), (0, 0)))
    wb = w.astype(jnp.bfloat16)

    if bias is None:
        kernel = _matmul_kernel
        in_specs = [
            pl.BlockSpec((tm, K), lambda i: (i, 0)),
            pl.BlockSpec((K, N), lambda i: (0, 0)),
        ]
        args = (xb, wb)
    else:
        kernel = _matmul_bias_kernel
        in_specs = [
            pl.BlockSpec((tm, K), lambda i: (i, 0)),
            pl.BlockSpec((K, N), lambda i: (0, 0)),
            pl.BlockSpec((1, N), lambda i: (0, 0)),
        ]
        args = (xb, wb, bias.reshape(1, N).astype(jnp.float32))

    out = pl.pallas_call(
        kernel,
        out_shape=jax.ShapeDtypeStruct((Mp, N), out_dtype),
        grid=(Mp // tm,),
        in_specs=in_specs,
        out_specs=pl.BlockSpec((tm, N), lambda i: (i, 0)),
        compiler_params=pltpu.CompilerParams(
            dimension_semantics=("parallel",),
            vmem_limit_bytes=_VMEM_LIMIT),
    )(*args)
    if Mp != M:
        out = out[:M]
    return out


def attention_pallas(qkv3, B, H, N, dh, scale, *, tq_max=256, tk_max=256,
                     out_dtype=jnp.bfloat16):
    """Flash attention over a shared (3*B, H, N, dh) bf16 QKV array.

    q = qkv3[b], k = qkv3[B+b], v = qkv3[2B+b] are selected purely through the
    BlockSpec index maps (no sliced q/k/v arrays are ever written to HBM).
    Returns the context of shape (B, H, N, dh).
    """
    tq = _pick_tile(N, tq_max)
    tk = _pick_tile(N, tk_max)
    n_q = N // tq
    n_kv = N // tk

    kern = functools.partial(_flash_attention_kernel, scale, _supports_bf16_eup())

    q_spec = pl.BlockSpec((1, H, tq, dh), lambda b, qi, ki: (b, 0, qi, 0))
    k_spec = pl.BlockSpec((1, H, tk, dh), lambda b, qi, ki: (B + b, 0, ki, 0))
    v_spec = pl.BlockSpec((1, H, tk, dh), lambda b, qi, ki: (2 * B + b, 0, ki, 0))
    o_spec = pl.BlockSpec((1, H, tq, dh), lambda b, qi, ki: (b, 0, qi, 0))

    return pl.pallas_call(
        kern,
        out_shape=jax.ShapeDtypeStruct((B, H, N, dh), out_dtype),
        grid=(B, n_q, n_kv),
        in_specs=[q_spec, k_spec, v_spec],
        out_specs=o_spec,
        scratch_shapes=[
            pltpu.VMEM((H, tq, 1), jnp.float32),    # running max m
            pltpu.VMEM((H, tq, 1), jnp.float32),    # running denom l
            pltpu.VMEM((H, tq, dh), jnp.float32),   # unnormalized context acc
        ],
        compiler_params=pltpu.CompilerParams(
            dimension_semantics=("parallel", "parallel", "arbitrary"),
            vmem_limit_bytes=_VMEM_LIMIT),
    )(qkv3, qkv3, qkv3)


# ---------------------------------------------------------------------------
# Parameter prep + MultiHeadAttention forward
# ---------------------------------------------------------------------------
def prepare_params(torch_params):
    """One-time conversion from PyTorch Linear layout (out, in) to
    MXU-friendly (in, out) bf16 weights. Done at load time, not per forward."""
    return {
        "w_qkv_t": torch_params["w_qkv"].T.astype(jnp.bfloat16),  # (D, 3D)
        "w_o_t": torch_params["w_o"].T.astype(jnp.bfloat16),      # (D, D)
        "b_o": torch_params["b_o"].astype(jnp.float32),           # (D,)
    }


def multi_head_attention_forward(x, prepared, num_heads):
    B, N, D = x.shape
    H = num_heads
    dh = D // H
    scale = dh ** (-0.5)

    # to_qkv: Linear(dim, 3*dim, bias=False). bf16 intermediate activations.
    qkv = matmul_pallas(x.reshape(B * N, D), prepared["w_qkv_t"],
                        out_dtype=jnp.bfloat16)                   # (B*N, 3D)

    # Exact replica of torch `qkv.view(3, B, h, -1, dim_head)` — raw row-major
    # reinterpretation, flattened to (3*B, H, N, dh) (free metadata reshape).
    # q/k/v become leading-axis views consumed directly by the attention
    # BlockSpecs — no sliced copies in HBM.
    qkv3 = qkv.reshape(3 * B, H, N, dh)

    ctx = attention_pallas(qkv3, B, H, N, dh, scale)              # (B, H, N, dh)

    # Exact replica of torch `context.view(B, -1, dim_head*h)` — free reshape.
    concat = ctx.reshape(B * N, D)

    # W_o: Linear(dim, dim) (+ Dropout -> identity in eval mode).
    out = matmul_pallas(concat, prepared["w_o_t"], bias=prepared["b_o"],
                        out_dtype=jnp.float32)
    return out.reshape(B, N, D)


# ---------------------------------------------------------------------------
# Pure-JAX f32 reference (mirrors the PyTorch forward) for correctness check
# ---------------------------------------------------------------------------
def ref_forward(x, params, num_heads):
    B, N, D = x.shape
    dh = D // num_heads
    scale = dh ** (-0.5)
    qkv = jnp.einsum("bnd,ed->bne", x, params["w_qkv"])
    qkvr = qkv.reshape(3, B, num_heads, -1, dh)
    q, k, v = qkvr[0], qkvr[1], qkvr[2]
    attn = jnp.einsum("bhnd,bhmd->bhnm", q, k) * scale
    w = jax.nn.softmax(attn, axis=-1)
    ctx = jnp.einsum("bhnm,bhmd->bhnd", w, v)
    concat = ctx.reshape(B, -1, D)
    return jnp.einsum("bnd,ed->bne", concat, params["w_o"]) + params["b_o"]


# ---------------------------------------------------------------------------
if __name__ == "__main__":
    # Small shapes consistent with the module: dim divisible by num_heads.
    B, N, D, H = 2, 8, 128, 8
    key = jax.random.PRNGKey(0)
    kx, kqkv, kwo, kbo = jax.random.split(key, 4)

    x = jax.random.normal(kx, (B, N, D), dtype=jnp.float32)

    # Deterministic PyTorch-style (Kaiming-uniform-ish) Linear init, stored in
    # the torch (out, in) layout; prepare_params transposes/casts once.
    bound = 1.0 / math.sqrt(D)
    torch_params = {
        "w_qkv": jax.random.uniform(kqkv, (3 * D, D), jnp.float32, -bound, bound),
        "w_o": jax.random.uniform(kwo, (D, D), jnp.float32, -bound, bound),
        "b_o": jax.random.uniform(kbo, (D,), jnp.float32, -bound, bound),
    }
    prepared = prepare_params(torch_params)

    out = multi_head_attention_forward(x, prepared, H)
    out = jax.block_until_ready(out)

    ref = jax.block_until_ready(ref_forward(x, torch_params, H))
    assert out.shape == (B, N, D) and out.dtype == jnp.float32
    max_err = float(jnp.max(jnp.abs(out - ref)))
    # bf16 MXU inputs / bf16 intermediates / approx reciprocal vs. f32 ref.
    assert jnp.allclose(out, ref, rtol=2e-2, atol=2e-2), max_err

    print("KERNEL_OK")
</pallas_src>

<mosaic_0001>
module attributes {stable_mosaic.version = 11 : i64} {
  func.func @_matmul_kernel(%arg0: i32, %arg1: memref<16x128xbf16, #tpu.memory_space<vmem>>, %arg2: memref<128x384xbf16, #tpu.memory_space<vmem>>, %arg3: memref<16x384xbf16, #tpu.memory_space<vmem>>) attributes {dimension_semantics = [#tpu.dimension_semantics<parallel>], iteration_bounds = array<i64: 1>, scalar_prefetch = 0 : i64, scratch_operands = 0 : i64, tpu.core_type = #tpu.core_type<tc>, window_params = [{transform_indices = @transform_0, window_bounds = array<i64: 16, 128>}, {pipeline_mode = #tpu.pipeline_mode<synchronous>, transform_indices = @transform_1, window_bounds = array<i64: 128, 384>}, {transform_indices = @transform_2, window_bounds = array<i64: 16, 384>}]} {
    %c0 = arith.constant 0 : index
    %c0_0 = arith.constant 0 : index
    %0 = vector.load %arg1[%c0, %c0_0] : memref<16x128xbf16, #tpu.memory_space<vmem>>, vector<16x128xbf16>
    %c0_1 = arith.constant 0 : index
    %c0_2 = arith.constant 0 : index
    %1 = vector.load %arg2[%c0_1, %c0_2] : memref<128x384xbf16, #tpu.memory_space<vmem>>, vector<128x384xbf16>
    %cst = arith.constant dense<0.000000e+00> : vector<16x384xf32>
    %2 = tpu.matmul %0, %1, %cst {dimension_numbers = #tpu.dot_dimension_numbers<[1], [0], [0], [1], [0, 0, 1, 1], [], []>} : vector<16x128xbf16>, vector<128x384xbf16>, vector<16x384xf32> -> vector<16x384xf32>
    %3 = arith.truncf %2 : vector<16x384xf32> to vector<16x384xbf16>
    %c0_3 = arith.constant 0 : index
    %c0_4 = arith.constant 0 : index
    %4 = vector.load %arg3[%c0_3, %c0_4] : memref<16x384xbf16, #tpu.memory_space<vmem>>, vector<16x384xbf16>
    tpu.vector_store %arg3[%c0_3, %c0_4], %3 {strides = array<i32>} : memref<16x384xbf16, #tpu.memory_space<vmem>>, vector<16x384xbf16>,
    return
  }
  func.func @transform_0(%arg0: i32) -> (i32, i32) {
    %c0_i32 = arith.constant 0 : i32
    %c0_i32_0 = arith.constant 0 : i32
    return %arg0, %c0_i32 : i32, i32
  }
  func.func @transform_1(%arg0: i32) -> (i32, i32) {
    %c0_i32 = arith.constant 0 : i32
    %c0_i32_0 = arith.constant 0 : i32
    %c0_i32_1 = arith.constant 0 : i32
    return %c0_i32, %c0_i32_0 : i32, i32
  }
  func.func @transform_2(%arg0: i32) -> (i32, i32) {
    %c0_i32 = arith.constant 0 : i32
    %c0_i32_0 = arith.constant 0 : i32
    return %arg0, %c0_i32 : i32, i32
  }
}

</mosaic_0001>

<bundles_post_ra>
// kernel: tpu_custom_call.1
= control target key start
LH: loop header
LB: loop body
LE: loop exit
PB: predicated region body
PF: predicated region fallthrough
CT: control target
= control target key end

     0   :  { %7 = vsyncpa [#allocation3], 0  ;;  %s579_s0 = inlined_call_operand.hbm [shape: bf16[16,128], index: 0, kind: input, shape index: {}]   ;;  %s580_s1 = inlined_call_operand.hbm [shape: bf16[128,384], index: 1, kind: input, shape index: {}]   ;;  %s581_s2 = inlined_call_operand.hbm [shape: bf16[16,384], index: 2, kind: output, shape index: {}]  }
   0x1   :  { %8 = vsyncpa [#allocation6], 0 }
   0x2   :  { %9 = vsyncpa [#allocation4], 0  ;;  %s512_s9 = smov [#allocation2]   ;;  %s440_s13 = scalar_lea.hbm %s579_s0, 128 }
   0x3   :  { %s15_s10 = sshll.u32 %s512_s9, 4  ;;  %p441_p0 = scmp.ne.s32.totalorder %s579_s0, %s440_s13  ;;  %s16_s10 = int_to_ptr.vmem [resolvable:$true] %s15_s10 }
   0x4   :  { %p444_p1 = scmp.lt.u32.totalorder %s440_s13, %s579_s0 }
   0x6   :  { %p446_p2 = pnand %p444_p1, %p441_p0 }
   0x8   :  { %449 = shalt.err (!%p446_p2)
}
   0x9   :  { %s450_s18 = scalar_lea.vmem %s16_s10, 128  ;;  %p455_p4 = scmp.lt.s32.totalorder %s16_s10, %s16_s10 }
   0xa   :  { %p451_p3 = scmp.ne.s32.totalorder %s16_s10, %s450_s18  ;;  %p456_p5 = scmp.lt.s32.totalorder %s450_s18, %s450_s18 }
   0xc   :  { %p457_p6 = por %p456_p5, %p455_p4 }
   0xe   :  { %p458_p7 = pnand %p457_p6, %p451_p3 }
  0x10   :  { %461 = shalt.err (!%p458_p7)
}
  0x11   :  { %s513_s19 = smov 64   ;;  %s514_s20 = smov 4  }
  0x12   :  { %21 = dma.hbm_to_vmem [thread:$0]  %s579_s0, 128, %s16_s10, [#allocation3], %s513_s19, %s513_s19, %s514_s20  }
  0x13   :  { %s515_s23 = smov [#allocation5]   ;;  %s462_s27 = scalar_lea.hbm %s580_s1, 3072 }
  0x14   :  { %s27_s24 = sshll.u32 %s515_s23, 4  ;;  %p463_p8 = scmp.ne.s32.totalorder %s580_s1, %s462_s27  ;;  %s28_s24 = int_to_ptr.vmem [resolvable:$true] %s27_s24 }
  0x15   :  { %p466_p9 = scmp.lt.u32.totalorder %s462_s27, %s580_s1 }
  0x17   :  { %p468_p10 = pnand %p466_p9, %p463_p8 }
  0x19   :  { %471 = shalt.err (!%p468_p10)
}
  0x1a   :  { %s472_s4 = scalar_lea.vmem %s28_s24, 3072  ;;  %p477_p12 = scmp.lt.s32.totalorder %s28_s24, %s28_s24 }
  0x1b   :  { %p473_p11 = scmp.ne.s32.totalorder %s28_s24, %s472_s4  ;;  %p478_p13 = scmp.lt.s32.totalorder %s472_s4, %s472_s4 }
  0x1d   :  { %p479_p0 = por %p478_p13, %p477_p12 }
  0x1f   :  { %p480_p1 = pnand %p479_p0, %p473_p11 }
  0x21   :  { %483 = shalt.err (!%p480_p1)
}
  0x22   :  { %s516_s0 = smov 192   ;;  %s517_s5 = smov 12  }
  0x23   :  { %33 = dma.hbm_to_vmem [thread:$0]  %s580_s1, 3072, %s28_s24, [#allocation6], %s516_s0, %s516_s0, %s517_s5  }
  0x24   :  { %506 = dma.done.wait [#allocation3], 128  }
  0x25   :  { %507 = vsyncadd [#allocation3], 4294967168 }
  0x26   :  { %508 = dma.done.wait [#allocation6], 3072  }
  0x27   :  { %509 = vsyncadd [#allocation6], 4294964224  ;;  %v518_v0 = vmov 0.0   ;;  %vm519_vm0 = vmmov 0   ;;  %v520_v1 = vmov 0   ;;  %v439_v26 = vld [vmem:[#allocation2] sm:$0xff]  }
  0x28   :  { %377 = vmatprep.subr.bf16.mxu1 %v518_v0  ;;  %393 = vmatprep.mubr.msk.bf16.mxu1 %vm519_vm0, %v518_v0  ;;  %v407_v2 = vld [vmem:[#allocation5 + $0x4] ss:$12 sps:$4 sm:$0xff]   ;;  %v409_v3 = vld [vmem:[#allocation5 + $0x8] ss:$12 sps:$4 sm:$0xff]   ;;  %v410_v4 = vld [vmem:[#allocation5] ss:$12 sps:$4 sm:$0xff]  }
  0x29   :  { %241 = vmatprep.mubr.bf16.mxu0 %v520_v1  ;;  %209 = vmatprep.subr.bf16.mxu0 %v407_v2  ;;  %v411_v5 = vld [vmem:[#allocation5 + $0x1c] ss:$12 sps:$4 sm:$0xff]   ;;  %v413_v6 = vld [vmem:[#allocation5 + $0x20] ss:$12 sps:$4 sm:$0xff]   ;;  %v414_v7 = vld [vmem:[#allocation5 + $0x18] ss:$12 sps:$4 sm:$0xff]  }
  0x2a   :  { %378 = vmatpush3.bf16.msra.mxu1 %v409_v3  ;;  %210 = vmatpush1.bf16.msra.mxu0 %v410_v4  ;;  %v415_v8 = vld [vmem:[#allocation5 + $0x34] ss:$12 sps:$4 sm:$0xff]   ;;  %v417_v9 = vld [vmem:[#allocation5 + $0x38] ss:$12 sps:$4 sm:$0xff]   ;;  %v418_v10 = vld [vmem:[#allocation5 + $0x30] ss:$12 sps:$4 sm:$0xff]  }
  0x2b   :  { %379 = vmatprep.subr.bf16.mxu1 %v518_v0  ;;  %211 = vmatprep.subr.bf16.mxu0 %v411_v5  ;;  %v419_v11 = vld [vmem:[#allocation5 + $0x4c] ss:$12 sps:$4 sm:$0xff]   ;;  %v421_v12 = vld [vmem:[#allocation5 + $0x50] ss:$12 sps:$4 sm:$0xff]   ;;  %v422_v13 = vld [vmem:[#allocation5 + $0x48] ss:$12 sps:$4 sm:$0xff]  }
  0x2c   :  { %v423_v14 = vld [vmem:[#allocation5 + $0x64] ss:$12 sps:$4 sm:$0xff]   ;;  %v425_v15 = vld [vmem:[#allocation5 + $0x68] ss:$12 sps:$4 sm:$0xff]   ;;  %v426_v16 = vld [vmem:[#allocation5 + $0x60] ss:$12 sps:$4 sm:$0xff]  }
  0x2d   :  { %v427_v17 = vld [vmem:[#allocation5 + $0x7c] ss:$12 sps:$4 sm:$0xff]   ;;  %v429_v18 = vld [vmem:[#allocation5 + $0x80] ss:$12 sps:$4 sm:$0xff]   ;;  %v430_v19 = vld [vmem:[#allocation5 + $0x78] ss:$12 sps:$4 sm:$0xff]  }
  0x2e   :  { %380 = vmatpush3.bf16.msra.mxu1 %v413_v6  ;;  %212 = vmatpush1.bf16.msra.mxu0 %v414_v7  ;;  %v431_v20 = vld [vmem:[#allocation5 + $0x94] ss:$12 sps:$4 sm:$0xff]   ;;  %v433_v21 = vld [vmem:[#allocation5 + $0x98] ss:$12 sps:$4 sm:$0xff]   ;;  %v434_v22 = vld [vmem:[#allocation5 + $0x90] ss:$12 sps:$4 sm:$0xff]  }
  0x2f   :  { %381 = vmatprep.subr.bf16.mxu1 %v518_v0  ;;  %213 = vmatprep.subr.bf16.mxu0 %v415_v8  ;;  %v435_v23 = vld [vmem:[#allocation5 + $0xac] ss:$12 sps:$4 sm:$0xff]   ;;  %v437_v24 = vld [vmem:[#allocation5 + $0xb0] ss:$12 sps:$4 sm:$0xff]   ;;  %v438_v25 = vld [vmem:[#allocation5 + $0xa8] ss:$12 sps:$4 sm:$0xff]  }
  0x30   :  { %s521_s1 = smov [#allocation7]  }
  0x31   :  { %s322_s8 = sshll.u32 %s521_s1, 4  ;;  %s323_s8 = int_to_ptr.vmem [resolvable:$true] %s322_s8 }
  0x32   :  { %382 = vmatpush3.bf16.msra.mxu1 %v417_v9  ;;  %214 = vmatpush1.bf16.msra.mxu0 %v418_v10  ;;  %s484_s9 = scalar_lea.vmem %s323_s8, 384  ;;  %p489_p3 = scmp.lt.s32.totalorder %s323_s8, %s323_s8 }
  0x33   :  { %383 = vmatprep.subr.bf16.mxu1 %v518_v0  ;;  %215 = vmatprep.subr.bf16.mxu0 %v419_v11  ;;  %p485_p2 = scmp.ne.s32.totalorder %s323_s8, %s484_s9  ;;  %p490_p4 = scmp.lt.s32.totalorder %s484_s9, %s484_s9 }
  0x35   :  { %p491_p5 = por %p490_p4, %p489_p3 }
  0x36   :  { %384 = vmatpush3.bf16.msra.mxu1 %v421_v12  ;;  %216 = vmatpush1.bf16.msra.mxu0 %v422_v13 }
  0x37   :  { %385 = vmatprep.subr.bf16.mxu1 %v518_v0  ;;  %217 = vmatprep.subr.bf16.mxu0 %v423_v14  ;;  %p492_p6 = pnand %p491_p5, %p485_p2 }
  0x3a   :  { %386 = vmatpush3.bf16.msra.mxu1 %v425_v15  ;;  %218 = vmatpush1.bf16.msra.mxu0 %v426_v16 }
  0x3b   :  { %387 = vmatprep.subr.bf16.mxu1 %v518_v0  ;;  %219 = vmatprep.subr.bf16.mxu0 %v427_v17 }
  0x3e   :  { %388 = vmatpush3.bf16.msra.mxu1 %v429_v18  ;;  %220 = vmatpush1.bf16.msra.mxu0 %v430_v19 }
  0x3f   :  { %389 = vmatprep.subr.bf16.mxu1 %v518_v0  ;;  %221 = vmatprep.subr.bf16.mxu0 %v431_v20 }
  0x42   :  { %390 = vmatpush3.bf16.msra.mxu1 %v433_v21  ;;  %222 = vmatpush1.bf16.msra.mxu0 %v434_v22 }
  0x43   :  { %391 = vmatprep.subr.bf16.mxu1 %v518_v0  ;;  %223 = vmatprep.subr.bf16.mxu0 %v435_v23 }
  0x46   :  { %392 = vmatpush3.bf16.msra.mxu1 %v437_v24  ;;  %224 = vmatpush1.bf16.msra.mxu0 %v438_v25 }
  0x49   :  { %394 = vmatmul.mubr.bf16.vlgmr.msra.gmra.mrb[0].mxu1 %v439_v26  ;;  %242 = vmatmul.mubr.bf16.vlgmr.msra.gmra.mrb[0].mxu0 %v439_v26 }
 0x11c   :  { %v286_v27 = vpop.f32.mrb[0].mxu1  ;;  %v243_v29 = vpop.f32.mrb[0].mxu0 }
 0x11d   :  { %v365_v28 = vpack.c.bf16 %v286_v27, %v286_v27  ;;  %v395_v30 = vpop.f32.mrb[1].mxu1  ;;  %v245_v31 = vpop.f32.mrb[1].mxu0 }
 0x11e   :  { %v289_v32 = vpop.f32.mrb[2].mxu1  ;;  %v364_v33 = vpack.c.bf16 %v245_v31, %v243_v29  ;;  %v247_v35 = vpop.f32.mrb[2].mxu0 }
 0x11f   :  { %314 = vst [vmem:[#allocation7 + $0x8] sm:$0xf] %v365_v28  ;;  %v367_v34 = vpack.c.bf16 %v289_v32, %v289_v32  ;;  %v396_v36 = vpop.f32.mrb[3].mxu1  ;;  %v249_v37 = vpop.f32.mrb[3].mxu0 }
 0x120   :  { %313 = vst [vmem:[#allocation7] sm:$0xff] %v364_v33  ;;  %v366_v38 = vpack.c.bf16 %v249_v37, %v247_v35 }
 0x121   :  { %316 = vst [vmem:[#allocation7 + $0x14] sm:$0xf] %v367_v34 }
 0x122   :  { %315 = vst [vmem:[#allocation7 + $0xc] sm:$0xff] %v366_v38 }
 0x123   :  { %495 = shalt.err (!%p492_p6)
}
 0x124   :  { %s496_s12 = scalar_lea.hbm %s581_s2, 384 }
 0x125   :  { %p497_p7 = scmp.ne.s32.totalorder %s581_s2, %s496_s12  ;;  %p500_p8 = scmp.lt.u32.totalorder %s496_s12, %s581_s2 }
 0x127   :  { %p502_p9 = pnand %p500_p8, %p497_p7 }
 0x129   :  { %505 = shalt.err (!%p502_p9)
}
 0x12a   :  { %328 = dma.vmem_to_hbm [thread:$0]  %s323_s8, 384, %s581_s2, [#allocation4], %s516_s0, %s516_s0, %s517_s5  }
 0x12b   :  { %510 = dma.done.wait [#allocation4], 384  }
 0x12c   :  { %511 = vsyncadd [#allocation4], 4294966912 }
 0x12d   :  { %332 = vsyncpa [#allocation3], 1 }
 0x12e   :  { %333 = vsyncpa [#allocation6], 1 }
 0x12f   :  { %334 = vsyncpa [#allocation4], 1 }

</bundles_post_ra>
